<compile_context>
chip_gen: v6e
topology: v6e:2x2x1
jax: 0.10.0
libtpu: 0.0.40
codegen_flags: <defaults>
</compile_context>

<pallas_src>
import functools

import jax
import jax.numpy as jnp
from jax.experimental import pallas as pl
from jax.experimental.pallas import tpu as pltpu


def _sigmoid_kernel(x_ref, o_ref):
    # Compute in f32; sigmoid(x) = 0.5 * (tanh(0.5*x) + 1)
    #   -> one EUP transcendental + two cheap VPU ops (free under the HBM
    #      load/store for a mem-bound elementwise kernel).
    x = x_ref[...].astype(jnp.float32)
    y = 0.5 * (jnp.tanh(0.5 * x) + 1.0)
    o_ref[...] = y.astype(o_ref.dtype)


# Gate for the gridless whole-array path: input + output bytes must fit
# comfortably in VMEM on every generation (v5e default scoped limit 16 MiB).
_SMALL_TOTAL_BYTES = 2 * 1024 * 1024  # 2 MiB (in + out)

_LANES = 128
_MAX_COLS = 1024          # 8 * 128 lane-dense slab width
_BLOCK_ROWS = 512         # (512, 1024) f32 block ~= 2 MiB per buffer


def _flat_2d_layout(total: int):
    """Pick a lane-dense (rows, cols) layout for `total` elements.

    Prefers wide (1024) columns; falls back to narrower multiples of 128;
    pads at most to the next multiple of 128 lanes.
    """
    for cols in (_MAX_COLS, 512, 256, _LANES):
        if total % cols == 0:
            return total // cols, cols, 0
    pad = (-total) % _LANES
    return (total + pad) // _LANES, _LANES, pad


@functools.partial(jax.jit, static_argnames=())
def sigmoid_pallas(x: jax.Array) -> jax.Array:
    """Elementwise sigmoid over an arbitrary-shape tensor via Pallas TPU kernels."""
    orig_shape = x.shape
    total = x.size
    dtype = x.dtype
    itemsize = jnp.dtype(dtype).itemsize

    rows, cols, pad = _flat_2d_layout(total)

    if pad == 0:
        x2d = jnp.reshape(x, (rows, cols))
    else:
        # Minimal pad (< 128 elements). The kernel computes sigmoid on the
        # padded garbage too; it is sliced off below -- do not remove the slice.
        x_flat = jnp.pad(jnp.reshape(x, (-1,)), (0, pad))
        x2d = jnp.reshape(x_flat, (rows, cols))

    total_bytes = 2 * rows * cols * itemsize  # input + output

    if total_bytes <= _SMALL_TOTAL_BYTES:
        # Tiny tensor: a single gridless call; whole-array block (full dims,
        # so the (8,128) divisibility rule is satisfied trivially).
        out2d = pl.pallas_call(
            _sigmoid_kernel,
            out_shape=jax.ShapeDtypeStruct((rows, cols), dtype),
            in_specs=[pl.BlockSpec(memory_space=pltpu.MemorySpace.VMEM)],
            out_specs=pl.BlockSpec(memory_space=pltpu.MemorySpace.VMEM),
        )(x2d)
    else:
        # Large tensor: pipelined, megacore-parallel tiled grid over rows.
        br = min(_BLOCK_ROWS, rows)
        # Block rows must be a multiple of 8 or equal to the full extent.
        if br != rows and br % 8 != 0:
            br = max(8, (br // 8) * 8)
        grid = (pl.cdiv(rows, br),)
        out2d = pl.pallas_call(
            _sigmoid_kernel,
            out_shape=jax.ShapeDtypeStruct((rows, cols), dtype),
            grid=grid,
            in_specs=[pl.BlockSpec((br, cols), lambda i: (i, 0))],
            out_specs=pl.BlockSpec((br, cols), lambda i: (i, 0)),
            compiler_params=pltpu.CompilerParams(
                dimension_semantics=("parallel",),
            ),
        )(x2d)

    if pad:
        out_flat = jnp.reshape(out2d, (-1,))[:total]
        return jnp.reshape(out_flat, orig_shape)
    return jnp.reshape(out2d, orig_shape)


if __name__ == "__main__":
    key = jax.random.PRNGKey(0)

    # Primary check: the module's CIFAR-like NCHW shape (small -> gridless path).
    x = jax.random.normal(key, (2, 4, 16, 16), dtype=jnp.float32)
    y = sigmoid_pallas(x)
    jax.block_until_ready(y)
    y_ref = jax.nn.sigmoid(x)
    assert y.shape == x.shape and y.dtype == x.dtype
    assert jnp.max(jnp.abs(y - y_ref)) < 1e-5

    # Secondary sanity check: exercise the tiled / parallel large-tensor path.
    x_big = jax.random.normal(jax.random.PRNGKey(1), (256, 4096), dtype=jnp.float32)
    y_big = sigmoid_pallas(x_big)
    jax.block_until_ready(y_big)
    assert jnp.max(jnp.abs(y_big - jax.nn.sigmoid(x_big))) < 1e-5

    print("KERNEL_OK")
</pallas_src>

<mosaic_0001>
module attributes {stable_mosaic.version = 11 : i64} {
  func.func @_sigmoid_kernel(%arg0: memref<2x1024xf32, #tpu.memory_space<vmem>>, %arg1: memref<2x1024xf32, #tpu.memory_space<vmem>>) attributes {dimension_semantics = [], scalar_prefetch = 0 : i64, scratch_operands = 0 : i64, tpu.core_type = #tpu.core_type<tc>} {
    %c0 = arith.constant 0 : index
    %c0_0 = arith.constant 0 : index
    %0 = vector.load %arg0[%c0, %c0_0] : memref<2x1024xf32, #tpu.memory_space<vmem>>, vector<2x1024xf32>
    %cst = arith.constant 5.000000e-01 : f32
    %1 = vector.broadcast %cst : f32 to vector<2x1024xf32>
    %2 = arith.mulf %1, %0 : vector<2x1024xf32>
    %3 = math.tanh %2 : vector<2x1024xf32>
    %cst_1 = arith.constant 1.000000e+00 : f32
    %4 = vector.broadcast %cst_1 : f32 to vector<2x1024xf32>
    %5 = arith.addf %3, %4 : vector<2x1024xf32>
    %cst_2 = arith.constant 5.000000e-01 : f32
    %6 = vector.broadcast %cst_2 : f32 to vector<2x1024xf32>
    %7 = arith.mulf %6, %5 : vector<2x1024xf32>
    %c0_3 = arith.constant 0 : index
    %c0_4 = arith.constant 0 : index
    %8 = vector.load %arg1[%c0_3, %c0_4] : memref<2x1024xf32, #tpu.memory_space<vmem>>, vector<2x1024xf32>
    tpu.vector_store %arg1[%c0_3, %c0_4], %7 {strides = array<i32>} : memref<2x1024xf32, #tpu.memory_space<vmem>>, vector<2x1024xf32>,
    return
  }
}

</mosaic_0001>

<bundles_post_ra>
// kernel: sigmoid_pallas.1
= control target key start
LH: loop header
LB: loop body
LE: loop exit
PB: predicated region body
PF: predicated region fallthrough
CT: control target
= control target key end

     0   :  { %s50_s0 = inlined_call_operand.vmem [shape: f32[2,1024], index: 0, kind: input, shape index: {}]   ;;  %s51_s1 = inlined_call_operand.vmem [shape: f32[2,1024], index: 1, kind: output, shape index: {}]  }
   0x1   :  { %v8_v0 = vld [vmem:[%s50_s0] sm:$0xff]  ;;  %v9_v1 = vld [vmem:[%s50_s0 + $0x8] sm:$0xff] }
   0x2   :  { %v10_v2 = vmul.f32 0.5, %v8_v0  ;;  %v11_v3 = vmul.f32 0.5, %v9_v1 }
   0x4   :  { %24 = vtanh.f32 %v10_v2 }
   0x5   :  { %26 = vtanh.f32 %v11_v3 }
  0x11   :  { %v25_v4 = vpop.eup %24 }
  0x12   :  { %v27_v5 = vpop.eup %26  ;;  %v14_v6 = vadd.f32 1.0, %v25_v4 }
  0x13   :  { %v15_v7 = vadd.f32 1.0, %v27_v5 }
  0x14   :  { %v16_v8 = vmul.f32 0.5, %v14_v6 }
  0x15   :  { %v17_v9 = vmul.f32 0.5, %v15_v7 }
  0x16   :  { %18 = vst [vmem:[%s51_s1] sm:$0xff] %v16_v8 }
  0x17   :  { %19 = vst [vmem:[%s51_s1 + $0x8] sm:$0xff] %v17_v9 }

</bundles_post_ra>
